<compile_context>
chip_gen: v5e
topology: v5e:2x2
jax: 0.10.0
libtpu: 0.0.40
codegen_flags: <defaults>
</compile_context>

<pallas_src>
import numpy as np
import jax
import jax.numpy as jnp
from jax.experimental import pallas as pl
from jax.experimental.pallas import tpu as pltpu

V = 17            # joints, fixed by Linear(17,17) / 17x17 adjacency
NUM_SUBSET = 3
_BF16 = jnp.bfloat16
_F32 = jnp.float32


def _const_spec(shape, buffered=True):
    """BlockSpec for a grid-invariant parameter (same block every step).
    Single-buffered when the installed Pallas supports pipeline_mode."""
    idx = lambda *_: (0,) * len(shape)
    if buffered:
        try:
            return pl.BlockSpec(shape, idx, pipeline_mode=pl.Buffered(1))
        except Exception:  # older Pallas without pipeline_mode / Buffered(1)
            pass
    return pl.BlockSpec(shape, idx)


# ----------------------------------------------------------------------------
# Kernel A: fused 1x1 convolutions (main 3*OC channels + residual down-proj)
# ----------------------------------------------------------------------------
def make_conv_kernel(OC3, has_down, NB):
    def kernel(x_ref, w_ref, b_ref, *out_refs):
        if has_down:
            mo_ref, do_ref = out_refs
        else:
            (mo_ref,) = out_refs
        for s in range(NB):                      # samples per grid step
            acc = jnp.dot(w_ref[...], x_ref[s],
                          preferred_element_type=_F32) + b_ref[...]   # (C4, TV)
            mo_ref[s] = acc[:OC3, :].astype(_BF16)
            if has_down:
                do_ref[s] = acc[OC3:, :].astype(_BF16)
    return kernel


# ----------------------------------------------------------------------------
# Kernel B: Spa_Atten + contraction + channel refinement + BN partial sums
# ----------------------------------------------------------------------------
def make_attn_contract_kernel(OC, T):
    OC3 = NUM_SUBSET * OC
    oc4 = OC // 4
    half = OC // 8

    def kernel(m_ref, wsa_ref, bsa_ref, wlt_ref, blt_ref, nla_ref, w3_ref,
               cr_ref, st_ref):
        m = m_ref[...]                           # (3*OC, T, V) bf16 (V minor)
        mf = m.astype(_F32)

        # --- pooled Q/K for all 24 (subset, quarter, half) groups ------------
        # leading-only reshape + two second-minor mean reductions (no dense
        # (24, 3*OC) pooling matmul / matrix kept in VMEM).
        m4 = mf.reshape(NUM_SUBSET * 8, half, T, V)
        qk = jnp.mean(jnp.mean(m4, axis=2), axis=1)          # (24, V)

        sa = jnp.maximum(
            jnp.dot(qk, wsa_ref[...], preferred_element_type=_F32)
            + bsa_ref[...], 0.0)                              # (24, V)
        ln = jnp.maximum(
            jnp.dot(qk, wlt_ref[...], preferred_element_type=_F32)
            + blt_ref[...], 0.0)                              # (24, V)
        sa_t = sa.T                                           # (V, 24)
        ln_t = ln.T

        # --- 21 outer products, stacked along a new leading axis, then ONE
        #     batched softmax over (21, V, V) ---------------------------------
        outs = []
        for i in range(NUM_SUBSET):                           # 12 self attentions
            base = i * 8
            for q in range(4):
                g = base + 2 * q
                outs.append(sa_t[:, g:g + 1] * sa[g + 1:g + 2, :])
        for i in range(NUM_SUBSET):                           # 9 cross attentions
            base = i * 8
            for q in range(3):
                gk = base + 2 * q + 1
                gq = base + 2 * (q + 1)
                outs.append(ln_t[:, gk:gk + 1] * ln[gq:gq + 1, :])
        logits = jnp.stack(outs, axis=0)                      # (21, V, V)
        logits = logits - jnp.max(logits, axis=-1, keepdims=True)
        e = jnp.exp(logits)
        smax = e * pl.reciprocal(jnp.sum(e, axis=-1, keepdims=True), approx=True)

        # --- 12 per-(subset, quarter) mix maps --------------------------------
        selfm = smax[:12].reshape(NUM_SUBSET, 4, V, V)
        crossm = smax[12:].reshape(NUM_SUBSET, 3, V, V)
        zer = jnp.zeros((NUM_SUBSET, 1, V, V), _F32)
        cprev = jnp.concatenate([zer, crossm], axis=1)
        cnext = jnp.concatenate([crossm, zer], axis=1)
        # 0.5*(self/2 + crosses/4) folded: 0.25*self + 0.125*(cprev+cnext)
        mix = (0.25 * selfm + 0.125 * (cprev + cnext)).reshape(12, V, V)

        # --- joint-dimension contraction; a_full is never materialized -------
        # mix part: 12 bf16 matmuls of shape (oc4*T, 17) @ (17, 17) (one
        # batched einsum), so the MXU M-dimension is actually filled.
        m_q = m.reshape(12, oc4, T, V).reshape(12, oc4 * T, V)
        r_mix = jnp.einsum('jmv,jvw->jmw', m_q, mix.astype(_BF16),
                           preferred_element_type=_F32)       # (12, oc4*T, V)
        r_mix = jnp.sum(r_mix.reshape(NUM_SUBSET, 4, oc4 * T, V), axis=0)
        r_mix = r_mix.reshape(4, oc4, T, V).reshape(OC, T, V)
        # nlA part: bf16 batched einsum; nlA streams from HBM single-buffered.
        # TODO(synk): regroup channels by (c mod groups) into <=24 big matmuls.
        r_nla = jnp.einsum('ctv,cvw->ctw', m, nla_ref[...],
                           preferred_element_type=_F32)       # (3*OC, T, V)
        r = r_mix + jnp.sum(r_nla.reshape(NUM_SUBSET, OC, T, V), axis=0)

        # --- channel refinement (avg pool -> k=3 conv over channels -> gate) -
        pooled = jnp.mean(jnp.mean(r, axis=2, keepdims=True), axis=1,
                          keepdims=True)                      # (OC, 1, 1)
        zc = jnp.zeros_like(pooled[:1])
        prev = jnp.concatenate([zc, pooled[:-1]], axis=0)
        nxt = jnp.concatenate([pooled[1:], zc], axis=0)
        gate = 1.0 + jax.nn.sigmoid(w3_ref[0] * prev + w3_ref[1] * pooled
                                    + w3_ref[2] * nxt)        # (OC, 1, 1)
        cr = r * gate                                         # (OC, T, V) f32

        # --- per-sample BN partial sums, lane-dense (8, OC) -------------------
        s1 = jnp.sum(cr, axis=2).T                            # (T, OC)
        s2 = jnp.sum(cr * cr, axis=2).T                       # (T, OC)
        ssum = jnp.sum(s1, axis=0, keepdims=True)             # (1, OC)
        ssq = jnp.sum(s2, axis=0, keepdims=True)              # (1, OC)
        st_ref[...] = jnp.concatenate(
            [ssum, ssq, jnp.zeros((6, OC), _F32)], axis=0)

        cr_ref[...] = cr.astype(_BF16)

    return kernel


# ----------------------------------------------------------------------------
# Kernel C: per-channel scale/shift (precomputed BN) + residual + ReLU
# ----------------------------------------------------------------------------
def make_bn_res_relu_kernel(mode):
    def kernel(pp_ref, cr_ref, *rest):
        if mode == "none":
            (out_ref,) = rest
        else:
            res_ref, out_ref = rest
        y = cr_ref[...].astype(_F32) * pp_ref[:, 0:1] + pp_ref[:, 1:2]
        if mode == "conv":
            y = y + res_ref[...].astype(_F32) * pp_ref[:, 2:3] + pp_ref[:, 3:4]
        elif mode == "identity":
            y = y + res_ref[...]
        out_ref[...] = jnp.maximum(y, 0.0)
    return kernel


# ----------------------------------------------------------------------------
# Wrapper
# ----------------------------------------------------------------------------
def spatial_mixformer_forward(x0, params, out_channels, groups=8, residual=True,
                              return_cr=False, buffered_params=True):
    N, Cin, T, Vx = x0.shape
    assert Vx == V
    OC = out_channels
    assert OC % 8 == 0
    OC3 = NUM_SUBSET * OC
    TV = T * V
    eps = 1e-5

    if not residual:
        mode = "none"
    elif Cin == OC:
        mode = "identity"
    else:
        mode = "conv"
    has_down = (mode == "conv")

    # Fuse the residual down-projection into the main 1x1 conv.
    if has_down:
        w_all = jnp.concatenate([params['w_conv'], params['w_down']], axis=0)
        b_all = jnp.concatenate([params['b_conv'], params['b_down']], axis=0)
    else:
        w_all = params['w_conv']
        b_all = params['b_conv']
    C4 = w_all.shape[0]

    x2f = x0.reshape(N, Cin, TV)                 # metadata-only flatten
    x2 = x2f.astype(_BF16)

    cspec = lambda shape: _const_spec(shape, buffered_params)

    # ---------------- kernel A: fused 1x1 convolutions ----------------------
    NB = 2 if (N % 2 == 0 and N >= 4) else 1     # samples per grid step
    kA = make_conv_kernel(OC3, has_down, NB)
    a_out_specs = [pl.BlockSpec((NB, OC3, TV), lambda i: (i, 0, 0))]
    a_out_shape = [jax.ShapeDtypeStruct((N, OC3, TV), _BF16)]
    if has_down:
        a_out_specs.append(pl.BlockSpec((NB, OC, TV), lambda i: (i, 0, 0)))
        a_out_shape.append(jax.ShapeDtypeStruct((N, OC, TV), _BF16))
    cost_a = pl.CostEstimate(
        flops=int(2 * N * C4 * Cin * TV), transcendentals=0,
        bytes_accessed=int(x2.size * 2 + w_all.size * 2 + N * C4 * TV * 2))
    a_res = pl.pallas_call(
        kA,
        grid=(N // NB,),
        in_specs=[pl.BlockSpec((NB, Cin, TV), lambda i: (i, 0, 0)),
                  cspec((C4, Cin)),
                  cspec((C4, 1))],
        out_specs=a_out_specs,
        out_shape=a_out_shape,
        compiler_params=pltpu.CompilerParams(
            dimension_semantics=("parallel",),
            vmem_limit_bytes=48 * 1024 * 1024),
        cost_estimate=cost_a,
    )(x2, w_all.astype(_BF16), b_all.reshape(C4, 1).astype(_F32))
    if has_down:
        m_flat, down_flat = a_res
    else:
        (m_flat,) = a_res

    # Metadata-only reshape: kernel B's BlockSpec DMA does the actual
    # (C, T*V) -> (C, T, V) layout change (no in-kernel staging loop).
    m3d = m_flat.reshape(N, OC3, T, V)

    # ---------------- kernel B: attention + contraction + CR + stats --------
    kB = make_attn_contract_kernel(OC, T)
    b_in_specs = [
        pl.BlockSpec((None, OC3, T, V), lambda n: (n, 0, 0, 0)),
        cspec((V, V)), cspec((1, V)),            # Spa_Att linear W^T / b
        cspec((V, V)), cspec((1, V)),            # outer linear W^T / b
        cspec((OC3, V, V)),                      # per-channel norm_learn_A (bf16)
        pl.BlockSpec(memory_space=pltpu.MemorySpace.SMEM),   # ChaRef conv1d taps
    ]
    b_out_specs = [
        pl.BlockSpec((None, OC, T, V), lambda n: (n, 0, 0, 0)),   # CR (bf16)
        pl.BlockSpec((None, 8, OC), lambda n: (n, 0, 0)),         # BN sums
    ]
    b_out_shape = [jax.ShapeDtypeStruct((N, OC, T, V), _BF16),
                   jax.ShapeDtypeStruct((N, 8, OC), _F32)]
    cost_b = pl.CostEstimate(
        flops=int(4 * N * OC3 * T * V * V),
        transcendentals=int(N * (21 * V * V + OC)),
        bytes_accessed=int(N * OC3 * T * V * 2 + OC3 * V * V * 2
                           + N * OC * T * V * 2 + N * 8 * OC * 4))
    cr_arr, stats = pl.pallas_call(
        kB,
        grid=(N,),
        in_specs=b_in_specs,
        out_specs=b_out_specs,
        out_shape=b_out_shape,
        compiler_params=pltpu.CompilerParams(
            dimension_semantics=("parallel",),
            vmem_limit_bytes=48 * 1024 * 1024),
        cost_estimate=cost_b,
    )(m3d, params['w_sa'].T, params['b_sa'].reshape(1, V),
      params['w_lin'].T, params['b_lin'].reshape(1, V),
      params['nlA'].reshape(OC3, V, V).astype(_BF16), params['w3'])

    # ---------------- XLA glue: per-channel BN scale/shift ------------------
    cnt = float(N * T * V)
    ssum = jnp.sum(stats[:, 0, :], axis=0)
    ssq = jnp.sum(stats[:, 1, :], axis=0)
    mean_m = ssum / cnt
    var_m = ssq / cnt - mean_m * mean_m
    # TODO(synk): one-pass variance of the (gamma=1e-6) main path; switch to
    # centered/Welford sums if this ever becomes precision-critical.
    a_m = 1e-6 * jax.lax.rsqrt(var_m + eps)
    b_m = -mean_m * a_m
    if mode == "conv":
        d32 = down_flat.astype(_F32)
        mu_d = jnp.mean(d32, axis=(0, 2))
        var_d = jnp.mean((d32 - mu_d[None, :, None]) ** 2, axis=(0, 2))
        a_d = jax.lax.rsqrt(var_d + eps)
        b_d = -mu_d * a_d
    else:
        a_d = jnp.zeros((OC,), _F32)
        b_d = jnp.zeros((OC,), _F32)
    pp = jnp.stack([a_m, b_m, a_d, b_d], axis=1).astype(_F32)   # (OC, 4)

    # ---------------- kernel C: scale-shift-add-relu on bf16 inputs ---------
    kC = make_bn_res_relu_kernel(mode)
    cr_flat = cr_arr.reshape(N, OC, TV)          # metadata-only flatten
    c_in_specs = [cspec((OC, 4)),
                  pl.BlockSpec((None, OC, TV), lambda n: (n, 0, 0))]
    c_inputs = [pp, cr_flat]
    if mode == "conv":
        c_in_specs.append(pl.BlockSpec((None, OC, TV), lambda n: (n, 0, 0)))
        c_inputs.append(down_flat)
    elif mode == "identity":
        c_in_specs.append(pl.BlockSpec((None, OC, TV), lambda n: (n, 0, 0)))
        c_inputs.append(x2f.astype(_F32))
    out_flat = pl.pallas_call(
        kC,
        grid=(N,),
        in_specs=c_in_specs,
        out_specs=pl.BlockSpec((None, OC, TV), lambda n: (n, 0, 0)),
        out_shape=jax.ShapeDtypeStruct((N, OC, TV), _F32),
        compiler_params=pltpu.CompilerParams(dimension_semantics=("parallel",)),
    )(*c_inputs)

    out = out_flat.reshape(N, OC, T, V)
    if return_cr:
        return out, cr_arr.astype(_F32)
    return out


# ----------------------------------------------------------------------------
# Deterministic parameter construction (shapes from Spatial_MixFormer.__init__)
# ----------------------------------------------------------------------------
def init_params(key, Cin, OC, groups=8):
    ks = jax.random.split(key, 8)
    OC3 = NUM_SUBSET * OC
    A_base = jax.random.uniform(ks[0], (NUM_SUBSET, V, V), jnp.float32)
    A_se = jnp.tile(A_base[:, None], (1, groups, 1, 1))
    A_geme = jnp.tile(A_base[:, None], (1, groups, 1, 1))          # init == A
    nlA = jnp.tile(A_se + A_geme, (1, OC // groups, 1, 1))         # (3, OC, 17, 17)
    return dict(
        w_conv=0.1 * jax.random.normal(ks[1], (OC3, Cin), jnp.float32),
        b_conv=jnp.zeros((OC3,), jnp.float32),                     # conv_init -> bias 0
        w_sa=0.2 * jax.random.normal(ks[2], (V, V), jnp.float32),
        b_sa=0.1 * jax.random.normal(ks[3], (V,), jnp.float32),
        w_lin=0.2 * jax.random.normal(ks[4], (V, V), jnp.float32),
        b_lin=0.1 * jax.random.normal(ks[5], (V,), jnp.float32),
        w3=0.5 * jax.random.normal(ks[6], (3,), jnp.float32),      # Conv1d(1,1,3) taps
        w_down=0.1 * jax.random.normal(ks[7], (OC, Cin), jnp.float32),
        b_down=jnp.zeros((OC,), jnp.float32),
        nlA=nlA,
    )


# ----------------------------------------------------------------------------
# Pure-JAX reference (direct transcription of the torch forward), for checking
# ----------------------------------------------------------------------------
def reference_forward(x0, params, out_channels, residual=True):
    N, Cin, T, Vx = x0.shape
    OC = out_channels
    oc4, half = OC // 4, OC // 8
    wc, bc = params['w_conv'], params['b_conv']
    m = jnp.einsum('oc,nctv->notv', wc, x0) + bc[None, :, None, None]
    m = m.reshape(N, NUM_SUBSET, OC, T, Vx)
    wsa, bsa = params['w_sa'], params['b_sa']
    wlin, blin = params['w_lin'], params['b_lin']
    nlA = params['nlA']

    def spa_att(xq):
        Qo = xq[:, :half].mean(axis=(1, 2))
        Ko = xq[:, half:].mean(axis=(1, 2))
        Qt = jax.nn.relu(Qo @ wsa.T + bsa)
        Kt = jax.nn.relu(Ko @ wsa.T + bsa)
        return jax.nn.softmax(Qt[:, :, None] * Kt[:, None, :], axis=-1), Qo, Ko

    def cross(Kq, Qn):
        a = jax.nn.relu(Kq @ wlin.T + blin)
        b = jax.nn.relu(Qn @ wlin.T + blin)
        return jax.nn.softmax(a[:, :, None] * b[:, None, :], axis=-1)

    A_final = []
    for i in range(NUM_SUBSET):
        res = [spa_att(m[:, i, q * oc4:(q + 1) * oc4]) for q in range(4)]
        atts = [r[0] for r in res]
        Qs = [r[1] for r in res]
        Ks = [r[2] for r in res]
        c01, c12, c23 = cross(Ks[0], Qs[1]), cross(Ks[1], Qs[2]), cross(Ks[2], Qs[3])
        qa = [atts[0] / 2 + c01 / 4,
              atts[1] / 2 + c01 / 4 + c12 / 4,
              atts[2] / 2 + c12 / 4 + c23 / 4,
              atts[3] / 2 + c23 / 4]
        full = jnp.concatenate([jnp.repeat(a[:, None], oc4, axis=1) for a in qa], axis=1)
        A_final.append(full * 0.5 + nlA[i][None])
    A_final = jnp.stack(A_final, axis=1)
    mo = jnp.einsum('nkctv,nkcvw->nctw', m, A_final)

    pooled = mo.mean(axis=(2, 3))
    w3 = params['w3']
    pad = jnp.pad(pooled, ((0, 0), (1, 1)))
    cr = w3[0] * pad[:, :-2] + w3[1] * pad[:, 1:-1] + w3[2] * pad[:, 2:]
    cro = mo * (1.0 + jax.nn.sigmoid(cr)[:, :, None, None])

    def bn(x, g):
        mu = x.mean(axis=(0, 2, 3), keepdims=True)
        var = ((x - mu) ** 2).mean(axis=(0, 2, 3), keepdims=True)
        return (x - mu) / jnp.sqrt(var + 1e-5) * g

    main = bn(cro, 1e-6)
    if residual and Cin == OC:
        down = x0
    elif not residual:
        down = 0.0
    else:
        dp = jnp.einsum('oc,nctv->notv', params['w_down'], x0) \
             + params['b_down'][None, :, None, None]
        down = bn(dp, 1.0)
    return jax.nn.relu(main + down), cro


if __name__ == "__main__":
    N, Cin, OC, T = 2, 4, 16, 8
    key = jax.random.PRNGKey(0)
    kx, kp = jax.random.split(key)
    x0 = jax.random.normal(kx, (N, Cin, T, V), jnp.float32)
    params = init_params(kp, Cin, OC)

    # MXU matmuls run in bf16; quantize the conv operands so reference and
    # kernel share identical conv inputs (lossless cast).
    quant = lambda a: a.astype(jnp.bfloat16).astype(jnp.float32)
    x0 = quant(x0)
    params['w_conv'] = quant(params['w_conv'])
    params['w_down'] = quant(params['w_down'])

    try:
        out, cr = spatial_mixformer_forward(x0, params, OC, return_cr=True)
        out = jax.block_until_ready(out)
    except Exception:
        # Fallback for Pallas versions without pipeline_mode=pl.Buffered(1).
        out, cr = spatial_mixformer_forward(x0, params, OC, return_cr=True,
                                            buffered_params=False)
        out = jax.block_until_ready(out)

    with jax.default_matmul_precision("highest"):
        ref_out, ref_cr = reference_forward(x0, params, OC)
    ref_out = jax.block_until_ready(ref_out)

    assert out.shape == (N, OC, T, V)
    # bf16 HBM intermediates (m / CR / down) and bf16 MXU contractions (perf
    # feedback) bound the error; compare at a matching tolerance.
    np.testing.assert_allclose(np.asarray(cr), np.asarray(ref_cr), rtol=2e-2, atol=2e-2)
    np.testing.assert_allclose(np.asarray(out), np.asarray(ref_out), rtol=2e-2, atol=2e-2)
    print("KERNEL_OK")
</pallas_src>

<mosaic_0001>
module attributes {stable_mosaic.version = 11 : i64} {
  func.func @kernel(%arg0: i32, %arg1: memref<1x4x136xbf16, #tpu.memory_space<vmem>>, %arg2: memref<64x4xbf16, #tpu.memory_space<vmem>>, %arg3: memref<64x1xf32, #tpu.memory_space<vmem>>, %arg4: memref<1x48x136xbf16, #tpu.memory_space<vmem>>, %arg5: memref<1x16x136xbf16, #tpu.memory_space<vmem>>) attributes {dimension_semantics = [#tpu.dimension_semantics<parallel>], iteration_bounds = array<i64: 2>, scalar_prefetch = 0 : i64, scratch_operands = 0 : i64, tpu.core_type = #tpu.core_type<tc>, window_params = [{transform_indices = @transform_0, window_bounds = array<i64: 1, 4, 136>}, {pipeline_mode = #tpu.pipeline_mode<synchronous>, transform_indices = @transform_1, window_bounds = array<i64: 64, 4>}, {pipeline_mode = #tpu.pipeline_mode<synchronous>, transform_indices = @transform_2, window_bounds = array<i64: 64, 1>}, {transform_indices = @transform_3, window_bounds = array<i64: 1, 48, 136>}, {transform_indices = @transform_4, window_bounds = array<i64: 1, 16, 136>}]} {
    %c0 = arith.constant 0 : index
    %c0_0 = arith.constant 0 : index
    %0 = vector.load %arg2[%c0, %c0_0] : memref<64x4xbf16, #tpu.memory_space<vmem>>, vector<64x4xbf16>
    %c0_1 = arith.constant 0 : index
    %c0_2 = arith.constant 0 : index
    %c0_3 = arith.constant 0 : index
    %1 = vector.load %arg1[%c0_1, %c0_2, %c0_3] : memref<1x4x136xbf16, #tpu.memory_space<vmem>>, vector<1x4x136xbf16>
    %2 = vector.shape_cast %1 : vector<1x4x136xbf16> to vector<4x136xbf16>
    %cst = arith.constant dense<0.000000e+00> : vector<64x136xf32>
    %3 = tpu.matmul %0, %2, %cst {dimension_numbers = #tpu.dot_dimension_numbers<[1], [0], [0], [1], [0, 0, 1, 1], [], []>} : vector<64x4xbf16>, vector<4x136xbf16>, vector<64x136xf32> -> vector<64x136xf32>
    %c0_4 = arith.constant 0 : index
    %c0_5 = arith.constant 0 : index
    %4 = vector.load %arg3[%c0_4, %c0_5] : memref<64x1xf32, #tpu.memory_space<vmem>>, vector<64x1xf32>
    %5 = vector.broadcast %4 : vector<64x1xf32> to vector<64x136xf32>
    %6 = arith.addf %3, %5 : vector<64x136xf32>
    %7 = vector.extract_strided_slice %6 {offsets = [0, 0], sizes = [48, 136], strides = [1, 1]} : vector<64x136xf32> to vector<48x136xf32>
    %8 = arith.truncf %7 : vector<48x136xf32> to vector<48x136xbf16>
    %c0_6 = arith.constant 0 : index
    %c0_7 = arith.constant 0 : index
    %c0_8 = arith.constant 0 : index
    %9 = vector.load %arg4[%c0_6, %c0_7, %c0_8] : memref<1x48x136xbf16, #tpu.memory_space<vmem>>, vector<1x48x136xbf16>
    %10 = vector.shape_cast %9 : vector<1x48x136xbf16> to vector<48x136xbf16>
    %11 = vector.shape_cast %8 : vector<48x136xbf16> to vector<1x48x136xbf16>
    tpu.vector_store %arg4[%c0_6, %c0_7, %c0_8], %11 {strides = array<i32>} : memref<1x48x136xbf16, #tpu.memory_space<vmem>>, vector<1x48x136xbf16>,
    %12 = vector.extract_strided_slice %6 {offsets = [48, 0], sizes = [16, 136], strides = [1, 1]} : vector<64x136xf32> to vector<16x136xf32>
    %13 = arith.truncf %12 : vector<16x136xf32> to vector<16x136xbf16>
    %c0_9 = arith.constant 0 : index
    %c0_10 = arith.constant 0 : index
    %c0_11 = arith.constant 0 : index
    %14 = vector.load %arg5[%c0_9, %c0_10, %c0_11] : memref<1x16x136xbf16, #tpu.memory_space<vmem>>, vector<1x16x136xbf16>
    %15 = vector.shape_cast %14 : vector<1x16x136xbf16> to vector<16x136xbf16>
    %16 = vector.shape_cast %13 : vector<16x136xbf16> to vector<1x16x136xbf16>
    tpu.vector_store %arg5[%c0_9, %c0_10, %c0_11], %16 {strides = array<i32>} : memref<1x16x136xbf16, #tpu.memory_space<vmem>>, vector<1x16x136xbf16>,
    return
  }
  func.func @transform_0(%arg0: i32) -> (i32, i32, i32) {
    %c0_i32 = arith.constant 0 : i32
    %c0_i32_0 = arith.constant 0 : i32
    %c0_i32_1 = arith.constant 0 : i32
    return %arg0, %c0_i32, %c0_i32_0 : i32, i32, i32
  }
  func.func @transform_1(%arg0: i32) -> (i32, i32) {
    %c0_i32 = arith.constant 0 : i32
    %c0_i32_0 = arith.constant 0 : i32
    %c0_i32_1 = arith.constant 0 : i32
    return %c0_i32, %c0_i32_0 : i32, i32
  }
  func.func @transform_2(%arg0: i32) -> (i32, i32) {
    %c0_i32 = arith.constant 0 : i32
    %c0_i32_0 = arith.constant 0 : i32
    %c0_i32_1 = arith.constant 0 : i32
    return %c0_i32, %c0_i32_0 : i32, i32
  }
  func.func @transform_3(%arg0: i32) -> (i32, i32, i32) {
    %c0_i32 = arith.constant 0 : i32
    %c0_i32_0 = arith.constant 0 : i32
    %c0_i32_1 = arith.constant 0 : i32
    return %arg0, %c0_i32, %c0_i32_0 : i32, i32, i32
  }
  func.func @transform_4(%arg0: i32) -> (i32, i32, i32) {
    %c0_i32 = arith.constant 0 : i32
    %c0_i32_0 = arith.constant 0 : i32
    %c0_i32_1 = arith.constant 0 : i32
    return %arg0, %c0_i32, %c0_i32_0 : i32, i32, i32
  }
}

module attributes {stable_mosaic.version = 11 : i64} {
  func.func @kernel(%arg0: i32, %arg1: memref<1x4x136xbf16, #tpu.memory_space<vmem>>, %arg2: memref<64x4xbf16, #tpu.memory_space<vmem>>, %arg3: memref<64x1xf32, #tpu.memory_space<vmem>>, %arg4: memref<1x48x136xbf16, #tpu.memory_space<vmem>>, %arg5: memref<1x16x136xbf16, #tpu.memory_space<vmem>>) attributes {dimension_semantics = [#tpu.dimension_semantics<parallel>], iteration_bounds = array<i64: 2>, scalar_prefetch = 0 : i64, scratch_operands = 0 : i64, tpu.core_type = #tpu.core_type<tc>, window_params = [{transform_indices = @transform_0, window_bounds = array<i64: 1, 4, 136>}, {pipeline_mode = #tpu.pipeline_mode<synchronous>, transform_indices = @transform_1, window_bounds = array<i64: 64, 4>}, {pipeline_mode = #tpu.pipeline_mode<synchronous>, transform_indices = @transform_2, window_bounds = array<i64: 64, 1>}, {transform_indices = @transform_3, window_bounds = array<i64: 1, 48, 136>}, {transform_indices = @transform_4, window_bounds = array<i64: 1, 16, 136>}]} {
    %c0 = arith.constant 0 : index
    %c0_0 = arith.constant 0 : index
    %0 = vector.load %arg2[%c0, %c0_0] : memref<64x4xbf16, #tpu.memory_space<vmem>>, vector<64x4xbf16>
    %c0_1 = arith.constant 0 : index
    %c0_2 = arith.constant 0 : index
    %c0_3 = arith.constant 0 : index
    %1 = vector.load %arg1[%c0_1, %c0_2, %c0_3] : memref<1x4x136xbf16, #tpu.memory_space<vmem>>, vector<1x4x136xbf16>
    %2 = vector.shape_cast %1 : vector<1x4x136xbf16> to vector<4x136xbf16>
    %cst = arith.constant dense<0.000000e+00> : vector<64x136xf32>
    %3 = tpu.matmul %0, %2, %cst {dimension_numbers = #tpu.dot_dimension_numbers<[1], [0], [0], [1], [0, 0, 1, 1], [], []>} : vector<64x4xbf16>, vector<4x136xbf16>, vector<64x136xf32> -> vector<64x136xf32>
    %c0_4 = arith.constant 0 : index
    %c0_5 = arith.constant 0 : index
    %4 = vector.load %arg3[%c0_4, %c0_5] : memref<64x1xf32, #tpu.memory_space<vmem>>, vector<64x1xf32>
    %5 = vector.broadcast %4 : vector<64x1xf32> to vector<64x136xf32>
    %6 = arith.addf %3, %5 : vector<64x136xf32>
    %7 = vector.extract_strided_slice %6 {offsets = [0, 0], sizes = [48, 136], strides = [1, 1]} : vector<64x136xf32> to vector<48x136xf32>
    %8 = arith.truncf %7 : vector<48x136xf32> to vector<48x136xbf16>
    %c0_6 = arith.constant 0 : index
    %c0_7 = arith.constant 0 : index
    %c0_8 = arith.constant 0 : index
    %9 = vector.load %arg4[%c0_6, %c0_7, %c0_8] : memref<1x48x136xbf16, #tpu.memory_space<vmem>>, vector<1x48x136xbf16>
    %10 = vector.shape_cast %9 : vector<1x48x136xbf16> to vector<48x136xbf16>
    %11 = vector.shape_cast %8 : vector<48x136xbf16> to vector<1x48x136xbf16>
    tpu.vector_store %arg4[%c0_6, %c0_7, %c0_8], %11 {strides = array<i32>} : memref<1x48x136xbf16, #tpu.memory_space<vmem>>, vector<1x48x136xbf16>,
    %12 = vector.extract_strided_slice %6 {offsets = [48, 0], sizes = [16, 136], strides = [1, 1]} : vector<64x136xf32> to vector<16x136xf32>
    %13 = arith.truncf %12 : vector<16x136xf32> to vector<16x136xbf16>
    %c0_9 = arith.constant 0 : index
    %c0_10 = arith.constant 0 : index
    %c0_11 = arith.constant 0 : index
    %14 = vector.load %arg5[%c0_9, %c0_10, %c0_11] : memref<1x16x136xbf16, #tpu.memory_space<vmem>>, vector<1x16x136xbf16>
    %15 = vector.shape_cast %14 : vector<1x16x136xbf16> to vector<16x136xbf16>
    %16 = vector.shape_cast %13 : vector<16x136xbf16> to vector<1x16x136xbf16>
    tpu.vector_store %arg5[%c0_9, %c0_10, %c0_11], %16 {strides = array<i32>} : memref<1x16x136xbf16, #tpu.memory_space<vmem>>, vector<1x16x136xbf16>,
    return
  }
  func.func @transform_0(%arg0: i32) -> (i32, i32, i32) {
    %c0_i32 = arith.constant 0 : i32
    %c0_i32_0 = arith.constant 0 : i32
    %c0_i32_1 = arith.constant 0 : i32
    return %arg0, %c0_i32, %c0_i32_0 : i32, i32, i32
  }
  func.func @transform_1(%arg0: i32) -> (i32, i32) {
    %c0_i32 = arith.constant 0 : i32
    %c0_i32_0 = arith.constant 0 : i32
    %c0_i32_1 = arith.constant 0 : i32
    return %c0_i32, %c0_i32_0 : i32, i32
  }
  func.func @transform_2(%arg0: i32) -> (i32, i32) {
    %c0_i32 = arith.constant 0 : i32
    %c0_i32_0 = arith.constant 0 : i32
    %c0_i32_1 = arith.constant 0 : i32
    return %c0_i32, %c0_i32_0 : i32, i32
  }
  func.func @transform_3(%arg0: i32) -> (i32, i32, i32) {
    %c0_i32 = arith.constant 0 : i32
    %c0_i32_0 = arith.constant 0 : i32
    %c0_i32_1 = arith.constant 0 : i32
    return %arg0, %c0_i32, %c0_i32_0 : i32, i32, i32
  }
  func.func @transform_4(%arg0: i32) -> (i32, i32, i32) {
    %c0_i32 = arith.constant 0 : i32
    %c0_i32_0 = arith.constant 0 : i32
    %c0_i32_1 = arith.constant 0 : i32
    return %arg0, %c0_i32, %c0_i32_0 : i32, i32, i32
  }
}

</mosaic_0001>

<bundles_post_ra>
// kernel: tpu_custom_call.1
= control target key start
LH: loop header
LB: loop body
LE: loop exit
PB: predicated region body
PF: predicated region fallthrough
CT: control target
= control target key end

     0   :  { %10 = vsyncpa [#allocation3], 0  ;;  %s923_s0 = inlined_call_operand.vmem [shape: bf16[2,4,136], index: 0, kind: input, shape index: {}]   ;;  %s924_s1 = inlined_call_operand.vmem [shape: bf16[64,4], index: 1, kind: input, shape index: {}]   ;;  %s925_s2 = inlined_call_operand.vmem [shape: f32[64,1], index: 2, kind: input, shape index: {}]   ;;  %s926_s3 = inlined_call_operand.hbm [shape: bf16[2,48,136], index: 3, kind: output, shape index: {0}]   ;;  %s927_s4 = inlined_call_operand.hbm [shape: bf16[2,16,136], index: 4, kind: output, shape index: {1}]  }
   0x1   :  { %12 = vsyncpa [#allocation3 + $0x1], 0 }
   0x2   :  { %13 = vsyncpa [#allocation5], 0 }
   0x3   :  { %15 = vsyncpa [#allocation5 + $0x1], 0  ;;  %s738_s15 = smov 0   ;;  %s740_s16 = smov 0  }
   0x4   :  { %s742_s17 = smov 0   ;;  %s744_s18 = smov 0  }
   0x5 LB: > { %s759_s19 = sadd.s32 4294967295, %s708_s18   ;;  %s517_s20 = sadd.s32 4294967294, %s708_s18   ;;  %s708_s18 = sphi %s744_s18, %s935_s18   ;;  %s704_s17 = sphi %s742_s17, %s934_s17   ;;  %s700_s16 = sphi %s740_s16, %s933_s16   ;;  %s696_s15 = sphi %s738_s15, %s932_s15  }
   0x6   : > { %s763_s21 = sadd.s32 1, %s708_s18   ;;  %s96_s22 = sadd.s32 1, %s704_s17 }
   0x7   : > { %s93_s23 = ssub.s32 %s708_s18, %s763_s21  ;;  %p106_p0 = scmp.ne.s32.totalorder %s704_s17, %s700_s16 }
   0x8   : > { %p94_p1 = scmp.eq.s32.totalorder %s93_s23, 0  ;;  %p107_p2 = scmp.eq.s32.totalorder %s759_s19, 1 }
   0x9   : > { %p112_p3 = scmp.ne.s32.totalorder %s700_s16, %s696_s15  ;;  %p113_p4 = scmp.eq.s32.totalorder %s517_s20, 1 }
   0xa   : > { %s774_s24 = scalar_select %p94_p1, %s704_s17, %s96_s22  }
   0xb   : > { %p776_p5 = por %p107_p2, %p106_p0  ;;  %p780_p6 = por %p113_p4, %p112_p3 }
   0xc   : > { %p520_p7 = scmp.ge.s32.totalorder %s708_s18, 1  ;;  %p171_p8 = scmp.lt.s32.totalorder %s708_s18, 3 }
   0xe   : > { %p172_p9 = pnand %p520_p7, %p171_p8 }
   0xf   : > { %p202_p10 = scmp.lt.s32.totalorder (!%p172_p9), %s759_s19, 1  ;;  %s828_s13 = sand.u32 (!%p172_p9), 1, %s700_s16  }
  0x10   : > { %175 = sbr.rel (%p172_p9) target bundleno = 211 (0xd3), region = 32  ;;  %s521_s29 = sshll.u32 (!%p172_p9), %s828_s13, 4 }
  0x11   : > { %s562_s14 = smul.u32 (!%p172_p9), 48, %s828_s13  ;;  %s559_s30 = sshll.u32 (!%p172_p9), %s759_s19, 4 }
  0x12   : > { %s563_s22 = smul.u32 (!%p172_p9), 48, %s759_s19  ;;  %s385_s12 = scalar_lea.sflag (!%p172_p9), [#allocation3], %s828_s13 }
  0x13   : > { %s835_s20 = scalar_lea.vmem (!%p172_p9), [#allocation2], %s562_s14 }
  0x14   : > { %s401_s28 = scalar_lea.hbm (!%p172_p9), %s926_s3, %s563_s22 }
  0x15   : > { %v710_v0 = vmov 0   ;;  %v219_v1 = vld [vmem:[%s925_s2 + $0x10] sm:$0xff]  ;;  %v217_v2 = vld [vmem:[%s925_s2] sm:$0xff]  ;;  %s203_s5 = scalar_select %p202_p10, %s759_s19, 1  ;;  %v220_v5 = vld [vmem:[%s925_s2 + $0x18] sm:$0xff]  ;;  %vm302_vm0 = vcmask 1041408  }
  0x16   : > { %612 = vset.pattern.permute.xlu1 %v710_v0  ;;  %611 = vset.pattern.permute.xlu0 %v710_v0  ;;  %v221_v3 = vld [vmem:[%s925_s2 + $0x20] sm:$0xff]  ;;  %v218_v6 = vld [vmem:[%s925_s2 + $0x8] sm:$0xff]  ;;  %v557_v13 = vld [vmem:[%s924_s1 + $0x10] sm:$0xff]  ;;  %vm289_vm1 = vcmask 31744   ;;  %vm371_vm2 = vcmask 1043456   ;;  %vm372_vm3 = vcmask 64516  }
  0x17   : > { %237 = vperm.xlu1 %612, %v219_v1   ;;  %227 = vperm.xlu0 %611, %v217_v2   ;;  %s554_s6 = sshll.u32 %s203_s5, 2  ;;  %v222_v7 = vld [vmem:[%s925_s2 + $0x28] sm:$0xff]  ;;  %v555_v8 = vld [vmem:[%s924_s1] sm:$0xff]  ;;  %v224_v14 = vld [vmem:[%s925_s2 + $0x38] sm:$0xff]  ;;  %s402_s5 = sshll.u32 %s835_s20, 4  ;;  %s864_s5 = int_to_ptr.vmem [resolvable:$true] %s402_s5 }
  0x18   : > { %613 = vset.pattern.permute.xlu2 %v710_v0  ;;  %s206_s9 = scalar_lea.vmem %s923_s0, %s554_s6  ;;  %v223_v15 = vld [vmem:[%s925_s2 + $0x30] sm:$0xff]  ;;  %v556_v16 = vld [vmem:[%s924_s1 + $0x8] sm:$0xff]  ;;  %v558_v17 = vld [vmem:[%s924_s1 + $0x18] sm:$0xff]  ;;  %s404_s6 = sshll.u32 %s401_s28, 4  ;;  %s866_s6 = int_to_ptr.hbm [resolvable:$true] %s404_s6 }
  0x19   : > { %v216_v4 = vld [vmem:[%s206_s9] sm:$0xf]  ;;  %247 = vperm.xlu2 %613, %v221_v3   ;;  %vm831_vm4 = vmor %vm372_vm3, %vm371_vm2  ;;  %s862_s9 = scalar_lea.hbm %s927_s4, %s559_s30  ;;  %s868_s19 = scalar_lea.vmem [#allocation4], %s521_s29 }
  0x1a   : > { %286 = vst [vmem:[#allocation1] ss:$4 sm:$0xff] %v216_v4  ;;  %s419_s10 = sshll.u32 %s868_s19, 4  ;;  %s421_s11 = sshll.u32 %s862_s9, 4  ;;  %s420_s10 = int_to_ptr.vmem [resolvable:$true] %s419_s10  ;;  %s422_s11 = int_to_ptr.hbm [resolvable:$true] %s421_s11 }
  0x1b   : > { %s628_s14 = sshra.s32 %s866_s6, 4  ;;  %s634_s28 = scalar_lea.hbm %s926_s3, 96  ;;  %s629_s14 = int_to_ptr.hbm [resolvable:$true] %s628_s14 }
  0x1c   : > { %s630_s22 = scalar_lea.hbm %s629_s14, 48  ;;  %p635_p0 = scmp.lt.s32.totalorder %s629_s14, %s926_s3 }
  0x1d   : > { %p631_p11 = scmp.ne.s32.totalorder %s629_s14, %s630_s22  ;;  %p636_p1 = scmp.lt.s32.totalorder %s634_s28, %s630_s22 }
  0x1f   : > { %242 = vperm.xlu1 %612, %v220_v5   ;;  %232 = vperm.xlu0 %611, %v218_v6   ;;  %p632_p12 = pnand %p631_p11, %p776_p5  ;;  %p637_p2 = por %p636_p1, %p635_p0 }
  0x21   : > { %v287_v9 = vld.sshfl [vmem:[#allocation1] sm:$0xff pattern:$0x73625140]  ;;  %v288_v10 = vld.sshfl [vmem:[#allocation1 + $0x8] sm:$0xff pattern:$0x73625140]  ;;  %252 = vperm.xlu2 %613, %v222_v7   ;;  %p633_p13 = pneg %p632_p12 }
  0x22   : > { %v303_v11 = vsel %vm302_vm0, %v287_v9, 0  ;;  %v305_v12 = vsel %vm302_vm0, %v288_v10, 0 }
  0x23   : > { %314 = vmatpush.bf16.msra.mxu0 %v303_v11  ;;  %560 = vmatpush.bf16.msra.mxu2 %v303_v11  ;;  %p638_p3 = pnand %p637_p2, %p633_p13 }
  0x24   : > { %343 = vmatpush.bf16.msra.mxu1 %v305_v12  ;;  %561 = vmatpush.bf16.msra.mxu3 %v305_v12 }
  0x26   : > { %540 = vmatmul.msk.bf16.vlgmr.msra.gmra.mxu0 %vm289_vm1, %v555_v8  ;;  %542 = vmatmul.msk.bf16.vlgmr.msra.gmra.mxu2 %vm289_vm1, %v557_v13 }
  0x27   : > { %262 = vperm.xlu1 %612, %v224_v14   ;;  %257 = vperm.xlu0 %611, %v223_v15  }
  0x28   : > { %544 = vmatmul.msk.bf16.vlgmr.msra.gmra.mxu1 %vm289_vm1, %v555_v8  ;;  %546 = vmatmul.msk.bf16.vlgmr.msra.gmra.mxu3 %vm289_vm1, %v557_v13 }
  0x36   : > { %541 = vmatmul.msk.bf16.gmra.mxu0 %vm289_vm1, %v556_v16  ;;  %543 = vmatmul.msk.bf16.gmra.mxu2 %vm289_vm1, %v558_v17 }
  0x38   : > { %545 = vmatmul.msk.bf16.gmra.mxu1 %vm289_vm1, %v556_v16  ;;  %547 = vmatmul.msk.bf16.gmra.mxu3 %vm289_vm1, %v558_v17 }
  0x73   : > { %v248_v23 = vpop.permute.xlu2 %247 }
  0x7b   : > { %v253_v38 = vpop.permute.xlu2 %252 }
  0x89   : > { %v228_v18 = vpop.permute.xlu0 %227  ;;  %v238_v34 = vpop.permute.xlu1 %237 }
  0x91   : > { %v233_v29 = vpop.permute.xlu0 %232  ;;  %v243_v48 = vpop.permute.xlu1 %242 }
  0x99   : > { %v258_v50 = vpop.permute.xlu0 %257  ;;  %v263_v61 = vpop.permute.xlu1 %262 }
  0xa3   : > { %v316_v19 = vpop.f32.mrf.mxu0 }
  0xa4   : > { %v317_v20 = vadd.f32 %v316_v19, %v228_v18 }
  0xa5   : > { %v345_v21 = vpop.f32.mrf.mxu1 }
  0xa6   : > { %v346_v22 = vadd.f32 %v345_v21, %v228_v18 }
  0xa8   : > { %v365_v25 = vpack.c.bf16 %v346_v22, %v317_v20 }
  0xa9   : > { %v326_v26 = vpop.f32.mrf.mxu2 }
  0xaa   : > { %374 = vst.msk [vmem:[%s835_s20] sm:$0xff] %vm831_vm4, %v365_v25  ;;  %v327_v27 = vadd.f32 %v326_v26, %v248_v23 }
  0xab   : > { %v355_v28 = vpop.f32.mrf.mxu3  ;;  %v318_v31 = vpop.f32.mrf.mxu0 }
  0xac   : > { %v356_v30 = vadd.f32 %v355_v28, %v248_v23  ;;  %v319_v32 = vadd.f32 %v318_v31, %v233_v29 }
  0xad   : > { %v347_v33 = vpop.f32.mrf.mxu1 }
  0xae   : > { %v369_v35 = vpack.c.bf16 %v356_v30, %v327_v27  ;;  %v348_v36 = vadd.f32 %v347_v33, %v233_v29 }
  0xb0   : > { %378 = vst.msk [vmem:[%s835_s20 + $0x20] sm:$0xff] %vm831_vm4, %v369_v35  ;;  %v366_v37 = vpack.c.bf16 %v348_v36, %v319_v32 }
  0xb1   : > { %v328_v39 = vpop.f32.mrf.mxu2 }
  0xb2   : > { %375 = vst.msk [vmem:[%s835_s20 + $0x8] sm:$0xff] %vm831_vm4, %v366_v37  ;;  %v329_v40 = vadd.f32 %v328_v39, %v253_v38 }
  0xb3   : > { %v357_v41 = vpop.f32.mrf.mxu3  ;;  %v321_v43 = vpop.f32.mrf.mxu0 }
  0xb4   : > { %v358_v42 = vadd.f32 %v357_v41, %v253_v38  ;;  %v322_v44 = vadd.f32 %v321_v43, %v238_v34 }
  0xb5   : > { %v350_v45 = vpop.f32.mrf.mxu1 }
  0xb6   : > { %v370_v46 = vpack.c.bf16 %v358_v42, %v329_v40  ;;  %v351_v47 = vadd.f32 %v350_v45, %v238_v34 }
  0xb8   : > { %379 = vst.msk [vmem:[%s835_s20 + $0x28] sm:$0xff] %vm831_vm4, %v370_v46  ;;  %v367_v49 = vpack.c.bf16 %v351_v47, %v322_v44 }
  0xb9   : > { %v331_v51 = vpop.f32.mrf.mxu2 }
  0xba   : > { %376 = vst.msk [vmem:[%s835_s20 + $0x10] sm:$0xff] %vm831_vm4, %v367_v49  ;;  %v332_v52 = vadd.f32 %v331_v51, %v258_v50 }
  0xbb   : > { %v360_v53 = vpop.f32.mrf.mxu3  ;;  %v323_v55 = vpop.f32.mrf.mxu0 }
  0xbc   : > { %v361_v54 = vadd.f32 %v360_v53, %v258_v50  ;;  %v324_v56 = vadd.f32 %v323_v55, %v243_v48 }
  0xbd   : > { %v352_v57 = vpop.f32.mrf.mxu1 }
  0xbe   : > { %v380_v58 = vpack.c.bf16 %v361_v54, %v332_v52  ;;  %v353_v59 = vadd.f32 %v352_v57, %v243_v48 }
  0xc0   : > { %382 = vst.msk [vmem:[%s868_s19] sm:$0xff] %vm831_vm4, %v380_v58  ;;  %v368_v60 = vpack.c.bf16 %v353_v59, %v324_v56 }
  0xc1   : > { %v333_v62 = vpop.f32.mrf.mxu2 }
  0xc2   : > { %377 = vst.msk [vmem:[%s835_s20 + $0x18] sm:$0xff] %vm831_vm4, %v368_v60  ;;  %v334_v63 = vadd.f32 %v333_v62, %v263_v61 }
  0xc3   : > { %v362_v0 = vpop.f32.mrf.mxu3 }
  0xc4   : > { %641 = shalt.err (!%p638_p3)
}
  0xc5   : > { %s711_s20 = smov 128   ;;  %s712_s7 = smov 8   ;;  %v363_v1 = vadd.f32 %v362_v0, %v263_v61 }
  0xc6   : > { %564 = dma.vmem_to_hbm [thread:$0]  (%p776_p5), %s864_s5, 768, %s866_s6, %s385_s12, %s711_s20, %s711_s20, %s712_s7  }
  0xc7   : > { %v381_v2 = vpack.c.bf16 %v363_v1, %v334_v63  ;;  %s390_s8 = scalar_lea.sflag [#allocation5], %s828_s13  ;;  %s656_s9 = sshra.s32 %s422_s11, 4  ;;  %s657_s9 = int_to_ptr.hbm [resolvable:$true] %s656_s9 }
  0xc8   : > { %s658_s14 = scalar_lea.hbm %s657_s9, 16  ;;  %s662_s27 = scalar_lea.hbm %s927_s4, 32 }
  0xc9   : > { %383 = vst.msk [vmem:[%s868_s19 + $0x8] sm:$0xff] %vm831_vm4, %v381_v2  ;;  %p659_p4 = scmp.ne.s32.totalorder %s657_s9, %s658_s14  ;;  %p663_p9 = scmp.lt.s32.totalorder %s657_s9, %s927_s4 }
  0xca   : > { %p664_p10 = scmp.lt.s32.totalorder %s662_s27, %s658_s14 }
  0xcb   : > { %p660_p7 = pnand %p659_p4, %p776_p5 }
  0xcc   : > { %p665_p11 = por %p664_p10, %p663_p9 }
  0xcd   : > { %p661_p8 = pneg %p660_p7 }
  0xcf   : > { %p666_p12 = pnand %p665_p11, %p661_p8 }
  0xd1   : > { %669 = shalt.err (!%p666_p12)
}
  0xd2   : > { %565 = dma.vmem_to_hbm [thread:$0]  (%p776_p5), %s420_s10, 256, %s422_s11, %s390_s8, %s711_s20, %s711_s20, %s712_s7  }
  0xd3 PF: > { %p575_p13 = scmp.ge.s32.totalorder %s708_s18, 2  ;;  %s436_s13 = sand.u32 1, %s696_s15  }
  0xd4   : > { %s437_s19 = scalar_lea.sflag [#allocation3], %s436_s13 }
  0xd5   : > { %p569_p0 = pnand %p575_p13, %p780_p6 }
  0xd7   : > { %p570_p1 = pneg %p569_p0 }
  0xd9   : > { %687 = dma.done.wait (%p570_p1), %s437_s19, 768  }
  0xda   : > { %689 = vsyncadd (%p570_p1), %s437_s19, 4294966528  ;;  %s447_s12 = scalar_lea.sflag [#allocation5], %s436_s13 }
  0xdb   : > { %691 = dma.done.wait (%p570_p1), %s447_s12, 256  }
  0xdc   : > { %693 = vsyncadd (%p570_p1), %s447_s12, 4294967040  ;;  %p18_p5 = scmp.ge.s32.totalorder %s763_s21, 4   ;;  %s932_s15 = smov %s700_s16 }
  0xdd   : > { %s933_s16 = smov %s704_s17  ;;  %s934_s17 = smov %s774_s24 }
  0xde   : > { %s935_s18 = smov %s763_s21  ;;  %20 = sbr.rel (!%p18_p5) target bundleno = 5 (0x5), region = 84 }
  0xe3   :  { %453 = vsyncpa [#allocation3], 1 }
  0xe4   :  { %455 = vsyncpa [#allocation3 + $0x1], 1 }
  0xe5   :  { %456 = vsyncpa [#allocation5], 1 }
  0xe6   :  { %458 = vsyncpa [#allocation5 + $0x1], 1 }

// kernel: tpu_custom_call.1
= control target key start
LH: loop header
LB: loop body
LE: loop exit
PB: predicated region body
PF: predicated region fallthrough
CT: control target
= control target key end

     0   :  { %10 = vsyncpa [#allocation3], 0  ;;  %s923_s0 = inlined_call_operand.vmem [shape: bf16[2,4,136], index: 0, kind: input, shape index: {}]   ;;  %s924_s1 = inlined_call_operand.vmem [shape: bf16[64,4], index: 1, kind: input, shape index: {}]   ;;  %s925_s2 = inlined_call_operand.vmem [shape: f32[64,1], index: 2, kind: input, shape index: {}]   ;;  %s926_s3 = inlined_call_operand.hbm [shape: bf16[2,48,136], index: 3, kind: output, shape index: {0}]   ;;  %s927_s4 = inlined_call_operand.hbm [shape: bf16[2,16,136], index: 4, kind: output, shape index: {1}]  }
   0x1   :  { %12 = vsyncpa [#allocation3 + $0x1], 0 }
   0x2   :  { %13 = vsyncpa [#allocation5], 0 }
   0x3   :  { %15 = vsyncpa [#allocation5 + $0x1], 0  ;;  %s738_s15 = smov 0   ;;  %s740_s16 = smov 0  }
   0x4   :  { %s742_s17 = smov 0   ;;  %s744_s18 = smov 0  }
   0x5 LB: > { %s759_s19 = sadd.s32 4294967295, %s708_s18   ;;  %s517_s20 = sadd.s32 4294967294, %s708_s18   ;;  %s708_s18 = sphi %s744_s18, %s935_s18   ;;  %s704_s17 = sphi %s742_s17, %s934_s17   ;;  %s700_s16 = sphi %s740_s16, %s933_s16   ;;  %s696_s15 = sphi %s738_s15, %s932_s15  }
   0x6   : > { %s763_s21 = sadd.s32 1, %s708_s18   ;;  %s96_s22 = sadd.s32 1, %s704_s17 }
   0x7   : > { %s93_s23 = ssub.s32 %s708_s18, %s763_s21  ;;  %p106_p0 = scmp.ne.s32.totalorder %s704_s17, %s700_s16 }
   0x8   : > { %p94_p1 = scmp.eq.s32.totalorder %s93_s23, 0  ;;  %p107_p2 = scmp.eq.s32.totalorder %s759_s19, 1 }
   0x9   : > { %p112_p3 = scmp.ne.s32.totalorder %s700_s16, %s696_s15  ;;  %p113_p4 = scmp.eq.s32.totalorder %s517_s20, 1 }
   0xa   : > { %s774_s24 = scalar_select %p94_p1, %s704_s17, %s96_s22  }
   0xb   : > { %p776_p5 = por %p107_p2, %p106_p0  ;;  %p780_p6 = por %p113_p4, %p112_p3 }
   0xc   : > { %p520_p7 = scmp.ge.s32.totalorder %s708_s18, 1  ;;  %p171_p8 = scmp.lt.s32.totalorder %s708_s18, 3 }
   0xe   : > { %p172_p9 = pnand %p520_p7, %p171_p8 }
   0xf   : > { %p202_p10 = scmp.lt.s32.totalorder (!%p172_p9), %s759_s19, 1  ;;  %s828_s13 = sand.u32 (!%p172_p9), 1, %s700_s16  }
  0x10   : > { %175 = sbr.rel (%p172_p9) target bundleno = 211 (0xd3), region = 32  ;;  %s521_s29 = sshll.u32 (!%p172_p9), %s828_s13, 4 }
  0x11   : > { %s562_s14 = smul.u32 (!%p172_p9), 48, %s828_s13  ;;  %s559_s30 = sshll.u32 (!%p172_p9), %s759_s19, 4 }
  0x12   : > { %s563_s22 = smul.u32 (!%p172_p9), 48, %s759_s19  ;;  %s385_s12 = scalar_lea.sflag (!%p172_p9), [#allocation3], %s828_s13 }
  0x13   : > { %s835_s20 = scalar_lea.vmem (!%p172_p9), [#allocation2], %s562_s14 }
  0x14   : > { %s401_s28 = scalar_lea.hbm (!%p172_p9), %s926_s3, %s563_s22 }
  0x15   : > { %v710_v0 = vmov 0   ;;  %v219_v1 = vld [vmem:[%s925_s2 + $0x10] sm:$0xff]  ;;  %v217_v2 = vld [vmem:[%s925_s2] sm:$0xff]  ;;  %s203_s5 = scalar_select %p202_p10, %s759_s19, 1  ;;  %v220_v5 = vld [vmem:[%s925_s2 + $0x18] sm:$0xff]  ;;  %vm302_vm0 = vcmask 1041408  }
  0x16   : > { %612 = vset.pattern.permute.xlu1 %v710_v0  ;;  %611 = vset.pattern.permute.xlu0 %v710_v0  ;;  %v221_v3 = vld [vmem:[%s925_s2 + $0x20] sm:$0xff]  ;;  %v218_v6 = vld [vmem:[%s925_s2 + $0x8] sm:$0xff]  ;;  %v557_v13 = vld [vmem:[%s924_s1 + $0x10] sm:$0xff]  ;;  %vm289_vm1 = vcmask 31744   ;;  %vm371_vm2 = vcmask 1043456   ;;  %vm372_vm3 = vcmask 64516  }
  0x17   : > { %237 = vperm.xlu1 %612, %v219_v1   ;;  %227 = vperm.xlu0 %611, %v217_v2   ;;  %s554_s6 = sshll.u32 %s203_s5, 2  ;;  %v222_v7 = vld [vmem:[%s925_s2 + $0x28] sm:$0xff]  ;;  %v555_v8 = vld [vmem:[%s924_s1] sm:$0xff]  ;;  %v224_v14 = vld [vmem:[%s925_s2 + $0x38] sm:$0xff]  ;;  %s402_s5 = sshll.u32 %s835_s20, 4  ;;  %s864_s5 = int_to_ptr.vmem [resolvable:$true] %s402_s5 }
  0x18   : > { %613 = vset.pattern.permute.xlu2 %v710_v0  ;;  %s206_s9 = scalar_lea.vmem %s923_s0, %s554_s6  ;;  %v223_v15 = vld [vmem:[%s925_s2 + $0x30] sm:$0xff]  ;;  %v556_v16 = vld [vmem:[%s924_s1 + $0x8] sm:$0xff]  ;;  %v558_v17 = vld [vmem:[%s924_s1 + $0x18] sm:$0xff]  ;;  %s404_s6 = sshll.u32 %s401_s28, 4  ;;  %s866_s6 = int_to_ptr.hbm [resolvable:$true] %s404_s6 }
  0x19   : > { %v216_v4 = vld [vmem:[%s206_s9] sm:$0xf]  ;;  %247 = vperm.xlu2 %613, %v221_v3   ;;  %vm831_vm4 = vmor %vm372_vm3, %vm371_vm2  ;;  %s862_s9 = scalar_lea.hbm %s927_s4, %s559_s30  ;;  %s868_s19 = scalar_lea.vmem [#allocation4], %s521_s29 }
  0x1a   : > { %286 = vst [vmem:[#allocation1] ss:$4 sm:$0xff] %v216_v4  ;;  %s419_s10 = sshll.u32 %s868_s19, 4  ;;  %s421_s11 = sshll.u32 %s862_s9, 4  ;;  %s420_s10 = int_to_ptr.vmem [resolvable:$true] %s419_s10  ;;  %s422_s11 = int_to_ptr.hbm [resolvable:$true] %s421_s11 }
  0x1b   : > { %s628_s14 = sshra.s32 %s866_s6, 4  ;;  %s634_s28 = scalar_lea.hbm %s926_s3, 96  ;;  %s629_s14 = int_to_ptr.hbm [resolvable:$true] %s628_s14 }
  0x1c   : > { %s630_s22 = scalar_lea.hbm %s629_s14, 48  ;;  %p635_p0 = scmp.lt.s32.totalorder %s629_s14, %s926_s3 }
  0x1d   : > { %p631_p11 = scmp.ne.s32.totalorder %s629_s14, %s630_s22  ;;  %p636_p1 = scmp.lt.s32.totalorder %s634_s28, %s630_s22 }
  0x1f   : > { %242 = vperm.xlu1 %612, %v220_v5   ;;  %232 = vperm.xlu0 %611, %v218_v6   ;;  %p632_p12 = pnand %p631_p11, %p776_p5  ;;  %p637_p2 = por %p636_p1, %p635_p0 }
  0x21   : > { %v287_v9 = vld.sshfl [vmem:[#allocation1] sm:$0xff pattern:$0x73625140]  ;;  %v288_v10 = vld.sshfl [vmem:[#allocation1 + $0x8] sm:$0xff pattern:$0x73625140]  ;;  %252 = vperm.xlu2 %613, %v222_v7   ;;  %p633_p13 = pneg %p632_p12 }
  0x22   : > { %v303_v11 = vsel %vm302_vm0, %v287_v9, 0  ;;  %v305_v12 = vsel %vm302_vm0, %v288_v10, 0 }
  0x23   : > { %314 = vmatpush.bf16.msra.mxu0 %v303_v11  ;;  %560 = vmatpush.bf16.msra.mxu2 %v303_v11  ;;  %p638_p3 = pnand %p637_p2, %p633_p13 }
  0x24   : > { %343 = vmatpush.bf16.msra.mxu1 %v305_v12  ;;  %561 = vmatpush.bf16.msra.mxu3 %v305_v12 }
  0x26   : > { %540 = vmatmul.msk.bf16.vlgmr.msra.gmra.mxu0 %vm289_vm1, %v555_v8  ;;  %542 = vmatmul.msk.bf16.vlgmr.msra.gmra.mxu2 %vm289_vm1, %v557_v13 }
  0x27   : > { %262 = vperm.xlu1 %612, %v224_v14   ;;  %257 = vperm.xlu0 %611, %v223_v15  }
  0x28   : > { %544 = vmatmul.msk.bf16.vlgmr.msra.gmra.mxu1 %vm289_vm1, %v555_v8  ;;  %546 = vmatmul.msk.bf16.vlgmr.msra.gmra.mxu3 %vm289_vm1, %v557_v13 }
  0x36   : > { %541 = vmatmul.msk.bf16.gmra.mxu0 %vm289_vm1, %v556_v16  ;;  %543 = vmatmul.msk.bf16.gmra.mxu2 %vm289_vm1, %v558_v17 }
  0x38   : > { %545 = vmatmul.msk.bf16.gmra.mxu1 %vm289_vm1, %v556_v16  ;;  %547 = vmatmul.msk.bf16.gmra.mxu3 %vm289_vm1, %v558_v17 }
  0x73   : > { %v248_v23 = vpop.permute.xlu2 %247 }
  0x7b   : > { %v253_v38 = vpop.permute.xlu2 %252 }
  0x89   : > { %v228_v18 = vpop.permute.xlu0 %227  ;;  %v238_v34 = vpop.permute.xlu1 %237 }
  0x91   : > { %v233_v29 = vpop.permute.xlu0 %232  ;;  %v243_v48 = vpop.permute.xlu1 %242 }
  0x99   : > { %v258_v50 = vpop.permute.xlu0 %257  ;;  %v263_v61 = vpop.permute.xlu1 %262 }
  0xa3   : > { %v316_v19 = vpop.f32.mrf.mxu0 }
  0xa4   : > { %v317_v20 = vadd.f32 %v316_v19, %v228_v18 }
  0xa5   : > { %v345_v21 = vpop.f32.mrf.mxu1 }
  0xa6   : > { %v346_v22 = vadd.f32 %v345_v21, %v228_v18 }
  0xa8   : > { %v365_v25 = vpack.c.bf16 %v346_v22, %v317_v20 }
  0xa9   : > { %v326_v26 = vpop.f32.mrf.mxu2 }
  0xaa   : > { %374 = vst.msk [vmem:[%s835_s20] sm:$0xff] %vm831_vm4, %v365_v25  ;;  %v327_v27 = vadd.f32 %v326_v26, %v248_v23 }
  0xab   : > { %v355_v28 = vpop.f32.mrf.mxu3  ;;  %v318_v31 = vpop.f32.mrf.mxu0 }
  0xac   : > { %v356_v30 = vadd.f32 %v355_v28, %v248_v23  ;;  %v319_v32 = vadd.f32 %v318_v31, %v233_v29 }
  0xad   : > { %v347_v33 = vpop.f32.mrf.mxu1 }
  0xae   : > { %v369_v35 = vpack.c.bf16 %v356_v30, %v327_v27  ;;  %v348_v36 = vadd.f32 %v347_v33, %v233_v29 }
  0xb0   : > { %378 = vst.msk [vmem:[%s835_s20 + $0x20] sm:$0xff] %vm831_vm4, %v369_v35  ;;  %v366_v37 = vpack.c.bf16 %v348_v36, %v319_v32 }
  0xb1   : > { %v328_v39 = vpop.f32.mrf.mxu2 }
  0xb2   : > { %375 = vst.msk [vmem:[%s835_s20 + $0x8] sm:$0xff] %vm831_vm4, %v366_v37  ;;  %v329_v40 = vadd.f32 %v328_v39, %v253_v38 }
  0xb3   : > { %v357_v41 = vpop.f32.mrf.mxu3  ;;  %v321_v43 = vpop.f32.mrf.mxu0 }
  0xb4   : > { %v358_v42 = vadd.f32 %v357_v41, %v253_v38  ;;  %v322_v44 = vadd.f32 %v321_v43, %v238_v34 }
  0xb5   : > { %v350_v45 = vpop.f32.mrf.mxu1 }
  0xb6   : > { %v370_v46 = vpack.c.bf16 %v358_v42, %v329_v40  ;;  %v351_v47 = vadd.f32 %v350_v45, %v238_v34 }
  0xb8   : > { %379 = vst.msk [vmem:[%s835_s20 + $0x28] sm:$0xff] %vm831_vm4, %v370_v46  ;;  %v367_v49 = vpack.c.bf16 %v351_v47, %v322_v44 }
  0xb9   : > { %v331_v51 = vpop.f32.mrf.mxu2 }
  0xba   : > { %376 = vst.msk [vmem:[%s835_s20 + $0x10] sm:$0xff] %vm831_vm4, %v367_v49  ;;  %v332_v52 = vadd.f32 %v331_v51, %v258_v50 }
  0xbb   : > { %v360_v53 = vpop.f32.mrf.mxu3  ;;  %v323_v55 = vpop.f32.mrf.mxu0 }
  0xbc   : > { %v361_v54 = vadd.f32 %v360_v53, %v258_v50  ;;  %v324_v56 = vadd.f32 %v323_v55, %v243_v48 }
  0xbd   : > { %v352_v57 = vpop.f32.mrf.mxu1 }
  0xbe   : > { %v380_v58 = vpack.c.bf16 %v361_v54, %v332_v52  ;;  %v353_v59 = vadd.f32 %v352_v57, %v243_v48 }
  0xc0   : > { %382 = vst.msk [vmem:[%s868_s19] sm:$0xff] %vm831_vm4, %v380_v58  ;;  %v368_v60 = vpack.c.bf16 %v353_v59, %v324_v56 }
  0xc1   : > { %v333_v62 = vpop.f32.mrf.mxu2 }
  0xc2   : > { %377 = vst.msk [vmem:[%s835_s20 + $0x18] sm:$0xff] %vm831_vm4, %v368_v60  ;;  %v334_v63 = vadd.f32 %v333_v62, %v263_v61 }
  0xc3   : > { %v362_v0 = vpop.f32.mrf.mxu3 }
  0xc4   : > { %641 = shalt.err (!%p638_p3)
}
  0xc5   : > { %s711_s20 = smov 128   ;;  %s712_s7 = smov 8   ;;  %v363_v1 = vadd.f32 %v362_v0, %v263_v61 }
  0xc6   : > { %564 = dma.vmem_to_hbm [thread:$0]  (%p776_p5), %s864_s5, 768, %s866_s6, %s385_s12, %s711_s20, %s711_s20, %s712_s7  }
  0xc7   : > { %v381_v2 = vpack.c.bf16 %v363_v1, %v334_v63  ;;  %s390_s8 = scalar_lea.sflag [#allocation5], %s828_s13  ;;  %s656_s9 = sshra.s32 %s422_s11, 4  ;;  %s657_s9 = int_to_ptr.hbm [resolvable:$true] %s656_s9 }
  0xc8   : > { %s658_s14 = scalar_lea.hbm %s657_s9, 16  ;;  %s662_s27 = scalar_lea.hbm %s927_s4, 32 }
  0xc9   : > { %383 = vst.msk [vmem:[%s868_s19 + $0x8] sm:$0xff] %vm831_vm4, %v381_v2  ;;  %p659_p4 = scmp.ne.s32.totalorder %s657_s9, %s658_s14  ;;  %p663_p9 = scmp.lt.s32.totalorder %s657_s9, %s927_s4 }
  0xca   : > { %p664_p10 = scmp.lt.s32.totalorder %s662_s27, %s658_s14 }
  0xcb   : > { %p660_p7 = pnand %p659_p4, %p776_p5 }
  0xcc   : > { %p665_p11 = por %p664_p10, %p663_p9 }
  0xcd   : > { %p661_p8 = pneg %p660_p7 }
  0xcf   : > { %p666_p12 = pnand %p665_p11, %p661_p8 }
  0xd1   : > { %669 = shalt.err (!%p666_p12)
}
  0xd2   : > { %565 = dma.vmem_to_hbm [thread:$0]  (%p776_p5), %s420_s10, 256, %s422_s11, %s390_s8, %s711_s20, %s711_s20, %s712_s7  }
  0xd3 PF: > { %p575_p13 = scmp.ge.s32.totalorder %s708_s18, 2  ;;  %s436_s13 = sand.u32 1, %s696_s15  }
  0xd4   : > { %s437_s19 = scalar_lea.sflag [#allocation3], %s436_s13 }
  0xd5   : > { %p569_p0 = pnand %p575_p13, %p780_p6 }
  0xd7   : > { %p570_p1 = pneg %p569_p0 }
  0xd9   : > { %687 = dma.done.wait (%p570_p1), %s437_s19, 768  }
  0xda   : > { %689 = vsyncadd (%p570_p1), %s437_s19, 4294966528  ;;  %s447_s12 = scalar_lea.sflag [#allocation5], %s436_s13 }
  0xdb   : > { %691 = dma.done.wait (%p570_p1), %s447_s12, 256  }
  0xdc   : > { %693 = vsyncadd (%p570_p1), %s447_s12, 4294967040  ;;  %p18_p5 = scmp.ge.s32.totalorder %s763_s21, 4   ;;  %s932_s15 = smov %s700_s16 }
  0xdd   : > { %s933_s16 = smov %s704_s17  ;;  %s934_s17 = smov %s774_s24 }
  0xde   : > { %s935_s18 = smov %s763_s21  ;;  %20 = sbr.rel (!%p18_p5) target bundleno = 5 (0x5), region = 84 }
  0xe3   :  { %453 = vsyncpa [#allocation3], 1 }
  0xe4   :  { %455 = vsyncpa [#allocation3 + $0x1], 1 }
  0xe5   :  { %456 = vsyncpa [#allocation5], 1 }
  0xe6   :  { %458 = vsyncpa [#allocation5 + $0x1], 1 }

</bundles_post_ra>
